<compile_context>
chip_gen: v7x
topology: tpu7x:2x2x1
jax: 0.10.0
libtpu: 0.0.40
codegen_flags: <defaults>
</compile_context>

<pallas_src>
import functools

import jax
import jax.numpy as jnp
from jax.experimental import pallas as pl
from jax.experimental.pallas import tpu as pltpu


# ---------------------------------------------------------------------------
# Kernels
# ---------------------------------------------------------------------------

def _crossnet_fused_kernel(dense_ref, sparse_ref, v_ref, w_ref, b_ref, o_ref,
                           x0_ref, *, num_layers, dense_dim):
    """Fused-input path: x0 is assembled in VMEM (no HBM `combined` array).

    dense:  [bt, D]            (f32 or bf16)
    sparse: [bt, F*D]          (f32 or bf16)
    v:      [L, N, R]  bf16    (pre-transposed V_l)
    w:      [L, R, N]  bf16    (pre-transposed W_l)
    b:      [L, 1, N]  f32
    o:      [bt, N]
    x0:     [bt, N]    f32     (VMEM scratch)
    """
    # Lane-aligned slice stores (wrapper guarantees D % 128 == 0 on this path).
    x0_ref[:, :dense_dim] = dense_ref[...].astype(jnp.float32)
    x0_ref[:, dense_dim:] = sparse_ref[...].astype(jnp.float32)

    x_l = x0_ref[...]
    for layer in range(num_layers):            # L is small & static -> unrolled
        xv = jnp.dot(x_l.astype(v_ref.dtype), v_ref[layer],
                     preferred_element_type=jnp.float32)            # [bt, R]
        xw = jnp.dot(xv.astype(w_ref.dtype), w_ref[layer],
                     preferred_element_type=jnp.float32)            # [bt, N]
        # Re-read x0 from the resident VMEM scratch each layer (vld is cheap)
        # instead of keeping it live across all unrolled layers.
        x_l = x0_ref[...] * (xw + b_ref[layer]) + x_l               # DCN-v2 update
    o_ref[...] = x_l.astype(o_ref.dtype)


def _crossnet_kernel(x0_ref, v_ref, w_ref, b_ref, o_ref, *, num_layers):
    """Fallback path: x0 ([bt, N]) was concatenated in the wrapper."""
    x_l = x0_ref[...].astype(jnp.float32)
    for layer in range(num_layers):
        xv = jnp.dot(x_l.astype(v_ref.dtype), v_ref[layer],
                     preferred_element_type=jnp.float32)
        xw = jnp.dot(xv.astype(w_ref.dtype), w_ref[layer],
                     preferred_element_type=jnp.float32)
        x_l = x0_ref[...].astype(jnp.float32) * (xw + b_ref[layer]) + x_l
    o_ref[...] = x_l.astype(o_ref.dtype)


# ---------------------------------------------------------------------------
# Parameters
# ---------------------------------------------------------------------------

def init_interaction_dcn_params(key, num_sparse_features, embedding_dim,
                                num_layers=3, low_rank=128,
                                weight_dtype=jnp.bfloat16):
    """LowRankCrossNet params: xavier-normal V/W (stored pre-transposed), zero bias.

    Choosing low_rank as a multiple of 128 keeps the [bt, R] intermediate
    lane-dense (the MXU slack absorbs the extra flops); any R is supported.
    """
    n = (num_sparse_features + 1) * embedding_dim
    std = (2.0 / (n + low_rank)) ** 0.5
    v_list, w_list = [], []
    keys = jax.random.split(key, 2 * num_layers)
    for layer in range(num_layers):
        v = jax.random.normal(keys[2 * layer], (low_rank, n), jnp.float32) * std      # torch V_l
        w = jax.random.normal(keys[2 * layer + 1], (n, low_rank), jnp.float32) * std  # torch W_l
        v_list.append(v.T)   # [N, R] so that x @ v_t == F.linear(x, V_l)
        w_list.append(w.T)   # [R, N] so that xv @ w_t == F.linear(xv, W_l)
    return dict(
        v_t=jnp.stack(v_list).astype(weight_dtype),        # [L, N, R]
        w_t=jnp.stack(w_list).astype(weight_dtype),        # [L, R, N]
        bias=jnp.zeros((num_layers, 1, n), jnp.float32),   # [L, 1, N]
    )


# ---------------------------------------------------------------------------
# Tiling / VMEM budgeting
# ---------------------------------------------------------------------------

def _vmem_budget_bytes():
    """Scoped-VMEM request with headroom for Mosaic internal scratch/semaphores.

    v5e/v6e (128 MiB physical) -> ~102 MiB; v7x (64 MiB physical) -> ~48 MiB.
    """
    try:
        phys = int(getattr(pltpu.get_tpu_info(), "vmem_capacity_bytes", 0))
    except Exception:
        phys = 0
    if phys <= 0:
        phys = 64 * 1024 * 1024            # conservative: assume v7x-sized VMEM
    return int(max(min(phys - 16 * 1024 * 1024, phys * 0.80), 16 * 1024 * 1024))


def _pick_batch_tile(batch, n, in_itemsize, out_itemsize, weight_bytes,
                     vmem_limit, block_batch):
    """Largest batch tile that (a) fits the VMEM budget net of resident weights,
    (b) is a multiple of 256/128/8 rows (MXU-friendly), and (c) leaves >= 2 grid
    steps for large batches so v7x megacore can shard the 'parallel' axis."""
    if batch < 8:
        return batch
    # Per-row VMEM: double-buffered input + output tiles, plus the f32 x0 scratch.
    per_row = n * (2 * in_itemsize + 2 * out_itemsize + 4)
    # Weights are default-double-buffered by the pipeline; account for 2x plus slack.
    # TODO(synk): if the stacked weights alone exceed the budget an N/R-tiled
    # variant (reduction grid axis) would be required.
    budget = vmem_limit - 2 * weight_bytes - (4 << 20)
    cap = max(8, budget // max(per_row, 1))
    bt = min(block_batch, batch, cap)
    if bt >= batch and batch >= 512:
        bt = -(-batch // 2)                # >= 2 grid steps -> both v7x TensorCores
    for align in (256, 128, 8):
        if bt >= align:
            bt = (bt // align) * align
            break
    return int(max(8, min(bt, batch)))


# ---------------------------------------------------------------------------
# Forward
# ---------------------------------------------------------------------------

def interaction_dcn_forward(dense_features, sparse_features, params, *,
                            block_batch=2048, out_dtype=jnp.float32):
    """dense_features: [B, D]; sparse_features: [B, F, D] (pooled embeddings).

    Returns crossnet(cat([dense, sparse], 1).reshape(B, (F+1)*D)) as `out_dtype`.
    """
    batch, dim = dense_features.shape
    num_sparse = 0 if sparse_features is None else sparse_features.shape[1]
    if num_sparse <= 0:                       # torch: `if self.F <= 0: return dense_features`
        return dense_features

    n = (num_sparse + 1) * dim
    out_dtype = jnp.dtype(out_dtype)
    v_t, w_t, bias = params["v_t"], params["w_t"], params["bias"]
    num_layers, _, low_rank = v_t.shape
    weight_bytes = (v_t.size * v_t.dtype.itemsize + w_t.size * w_t.dtype.itemsize
                    + bias.size * bias.dtype.itemsize)

    in_itemsize = dense_features.dtype.itemsize
    vmem_limit = _vmem_budget_bytes()
    bt = _pick_batch_tile(batch, n, in_itemsize, out_dtype.itemsize,
                          weight_bytes, vmem_limit, block_batch)
    batch_pad = -(-batch // bt) * bt
    grid = (batch_pad // bt,)

    # Stacked weights: constant index_map -> DMA'd once, resident across the grid.
    # TODO(synk): pipeline_mode=pl.Buffered(1) would halve their VMEM residency;
    # kept default-buffered and accounted for (2x) in the tile-size budget instead.
    weight_specs = [
        pl.BlockSpec((num_layers, n, low_rank), lambda i: (0, 0, 0)),   # V (pre-T)
        pl.BlockSpec((num_layers, low_rank, n), lambda i: (0, 0, 0)),   # W (pre-T)
        pl.BlockSpec((num_layers, 1, n), lambda i: (0, 0, 0)),          # bias
    ]
    flops = int(num_layers * batch_pad * (4 * n * low_rank + 4 * n))
    bytes_accessed = int(batch_pad * n * (in_itemsize + out_dtype.itemsize) + weight_bytes)
    compiler_params = pltpu.CompilerParams(
        dimension_semantics=("parallel",),     # crossnet is strictly per-row -> megacore-safe
        vmem_limit_bytes=int(vmem_limit),
    )
    cost = pl.CostEstimate(flops=flops, transcendentals=0, bytes_accessed=bytes_accessed)

    if dim % 128 == 0:
        # Fused-input path: no HBM materialization of `combined`. The sparse reshape
        # below is a contiguous collapse (layout no-op); x0 is assembled in VMEM.
        sparse_flat = sparse_features.reshape(batch, num_sparse * dim)
        dense_in = dense_features
        if batch_pad != batch:
            dense_in = jnp.pad(dense_in, ((0, batch_pad - batch), (0, 0)))
            sparse_flat = jnp.pad(sparse_flat, ((0, batch_pad - batch), (0, 0)))
        out = pl.pallas_call(
            functools.partial(_crossnet_fused_kernel,
                              num_layers=int(num_layers), dense_dim=int(dim)),
            out_shape=jax.ShapeDtypeStruct((batch_pad, n), out_dtype),
            grid_spec=pltpu.PrefetchScalarGridSpec(
                num_scalar_prefetch=0,
                grid=grid,
                in_specs=[
                    pl.BlockSpec((bt, dim), lambda i: (i, 0)),          # dense tile
                    pl.BlockSpec((bt, n - dim), lambda i: (i, 0)),      # sparse tile (flat)
                    *weight_specs,
                ],
                out_specs=pl.BlockSpec((bt, n), lambda i: (i, 0)),
                scratch_shapes=[pltpu.VMEM((bt, n), jnp.float32)],      # x0 scratch
            ),
            compiler_params=compiler_params,
            cost_estimate=cost,
        )(dense_in, sparse_flat, v_t, w_t, bias)
    else:
        # Fallback: D not a multiple of 128 -> assemble `combined` in the wrapper.
        # TODO(synk): in-kernel assembly for D % 128 != 0 needs unaligned lane-slice
        # stores / minor-dim concat; left on the (extra-HBM-pass) wrapper path.
        combined = jnp.concatenate(
            [dense_features[:, None, :], sparse_features], axis=1).reshape(batch, n)
        if batch_pad != batch:
            combined = jnp.pad(combined, ((0, batch_pad - batch), (0, 0)))
        out = pl.pallas_call(
            functools.partial(_crossnet_kernel, num_layers=int(num_layers)),
            out_shape=jax.ShapeDtypeStruct((batch_pad, n), out_dtype),
            grid_spec=pltpu.PrefetchScalarGridSpec(
                num_scalar_prefetch=0,
                grid=grid,
                in_specs=[pl.BlockSpec((bt, n), lambda i: (i, 0)), *weight_specs],
                out_specs=pl.BlockSpec((bt, n), lambda i: (i, 0)),
            ),
            compiler_params=compiler_params,
            cost_estimate=cost,
        )(combined, v_t, w_t, bias)

    return out[:batch]


# ---------------------------------------------------------------------------
# Pure-JAX reference (mirrors the kernel's mixed-precision choices)
# ---------------------------------------------------------------------------

def _interaction_dcn_reference(dense_features, sparse_features, params):
    batch = dense_features.shape[0]
    x0 = jnp.concatenate(
        [dense_features[:, None, :], sparse_features], axis=1
    ).reshape(batch, -1).astype(jnp.float32)
    x_l = x0
    for layer in range(params["v_t"].shape[0]):
        xv = jnp.dot(x_l.astype(params["v_t"].dtype), params["v_t"][layer],
                     preferred_element_type=jnp.float32)
        xw = jnp.dot(xv.astype(params["w_t"].dtype), params["w_t"][layer],
                     preferred_element_type=jnp.float32)
        x_l = x0 * (xw + params["bias"][layer]) + x_l
    return x_l


if __name__ == "__main__":
    key = jax.random.PRNGKey(0)
    k1, k2, k3, k4, k5, k6 = jax.random.split(key, 6)

    # --- Test 1: lane-aligned embedding dim (DLRM-DCN style D=128) -> fused-input path.
    batch, dim, num_sparse = 8, 128, 3          # N = (3 + 1) * 128 = 512
    dense = jax.random.normal(k1, (batch, dim), jnp.float32)
    sparse = jax.random.normal(k2, (batch, num_sparse, dim), jnp.float32)
    params = init_interaction_dcn_params(k3, num_sparse, dim,
                                         num_layers=3, low_rank=128)
    out = interaction_dcn_forward(dense, sparse, params)
    jax.block_until_ready(out)
    assert out.shape == (batch, (num_sparse + 1) * dim)
    ref = _interaction_dcn_reference(dense, sparse, params)
    assert bool(jnp.all(jnp.isfinite(out)))
    assert bool(jnp.allclose(out, ref, rtol=1e-3, atol=1e-3))

    # --- Test 2: non-lane-aligned D -> wrapper-concat fallback path.
    batch2, dim2, num_sparse2 = 8, 16, 7        # N = (7 + 1) * 16 = 128
    dense2 = jax.random.normal(k4, (batch2, dim2), jnp.float32)
    sparse2 = jax.random.normal(k5, (batch2, num_sparse2, dim2), jnp.float32)
    params2 = init_interaction_dcn_params(k6, num_sparse2, dim2,
                                          num_layers=3, low_rank=32)
    out2 = interaction_dcn_forward(dense2, sparse2, params2)
    jax.block_until_ready(out2)
    assert out2.shape == (batch2, (num_sparse2 + 1) * dim2)
    ref2 = _interaction_dcn_reference(dense2, sparse2, params2)
    assert bool(jnp.allclose(out2, ref2, rtol=1e-3, atol=1e-3))

    print("KERNEL_OK")
</pallas_src>

<mosaic_0001>
module attributes {stable_mosaic.version = 11 : i64} {
  func.func @_crossnet_fused_kernel(%arg0: i32, %arg1: memref<8x128xf32, #tpu.memory_space<vmem>>, %arg2: memref<8x384xf32, #tpu.memory_space<vmem>>, %arg3: memref<3x512x128xbf16, #tpu.memory_space<vmem>>, %arg4: memref<3x128x512xbf16, #tpu.memory_space<vmem>>, %arg5: memref<3x1x512xf32, #tpu.memory_space<vmem>>, %arg6: memref<8x512xf32, #tpu.memory_space<vmem>>, %arg7: memref<8x512xf32, #tpu.memory_space<vmem>>) attributes {dimension_semantics = [#tpu.dimension_semantics<parallel>], iteration_bounds = array<i64: 1>, scalar_prefetch = 0 : i64, scratch_operands = 1 : i64, tpu.core_type = #tpu.core_type<tc>, window_params = [{transform_indices = @transform_0, window_bounds = array<i64: 8, 128>}, {transform_indices = @transform_1, window_bounds = array<i64: 8, 384>}, {pipeline_mode = #tpu.pipeline_mode<synchronous>, transform_indices = @transform_2, window_bounds = array<i64: 3, 512, 128>}, {pipeline_mode = #tpu.pipeline_mode<synchronous>, transform_indices = @transform_3, window_bounds = array<i64: 3, 128, 512>}, {pipeline_mode = #tpu.pipeline_mode<synchronous>, transform_indices = @transform_4, window_bounds = array<i64: 3, 1, 512>}, {transform_indices = @transform_5, window_bounds = array<i64: 8, 512>}]} {
    %c0 = arith.constant 0 : index
    %c0_0 = arith.constant 0 : index
    %0 = vector.load %arg1[%c0, %c0_0] : memref<8x128xf32, #tpu.memory_space<vmem>>, vector<8x128xf32>
    %c0_1 = arith.constant 0 : index
    %c0_2 = arith.constant 0 : index
    %1 = vector.load %arg7[%c0_1, %c0_2] : memref<8x512xf32, #tpu.memory_space<vmem>>, vector<8x128xf32>
    tpu.vector_store %arg7[%c0_1, %c0_2], %0 {strides = array<i32>} : memref<8x512xf32, #tpu.memory_space<vmem>>, vector<8x128xf32>,
    %c0_3 = arith.constant 0 : index
    %c0_4 = arith.constant 0 : index
    %2 = vector.load %arg2[%c0_3, %c0_4] : memref<8x384xf32, #tpu.memory_space<vmem>>, vector<8x384xf32>
    %c0_5 = arith.constant 0 : index
    %c128 = arith.constant 128 : index
    %3 = vector.load %arg7[%c0_5, %c128] : memref<8x512xf32, #tpu.memory_space<vmem>>, vector<8x384xf32>
    tpu.vector_store %arg7[%c0_5, %c128], %2 {strides = array<i32>} : memref<8x512xf32, #tpu.memory_space<vmem>>, vector<8x384xf32>,
    %c0_6 = arith.constant 0 : index
    %c0_7 = arith.constant 0 : index
    %4 = vector.load %arg7[%c0_6, %c0_7] : memref<8x512xf32, #tpu.memory_space<vmem>>, vector<8x512xf32>
    %5 = arith.truncf %4 : vector<8x512xf32> to vector<8x512xbf16>
    %c0_8 = arith.constant 0 : index
    %c0_9 = arith.constant 0 : index
    %c0_10 = arith.constant 0 : index
    %6 = vector.load %arg3[%c0_8, %c0_9, %c0_10] : memref<3x512x128xbf16, #tpu.memory_space<vmem>>, vector<1x512x128xbf16>
    %7 = vector.shape_cast %6 : vector<1x512x128xbf16> to vector<512x128xbf16>
    %cst = arith.constant dense<0.000000e+00> : vector<8x128xf32>
    %8 = tpu.matmul %5, %7, %cst {dimension_numbers = #tpu.dot_dimension_numbers<[1], [0], [0], [1], [0, 0, 1, 1], [], []>} : vector<8x512xbf16>, vector<512x128xbf16>, vector<8x128xf32> -> vector<8x128xf32>
    %9 = arith.truncf %8 : vector<8x128xf32> to vector<8x128xbf16>
    %c0_11 = arith.constant 0 : index
    %c0_12 = arith.constant 0 : index
    %c0_13 = arith.constant 0 : index
    %10 = vector.load %arg4[%c0_11, %c0_12, %c0_13] : memref<3x128x512xbf16, #tpu.memory_space<vmem>>, vector<1x128x512xbf16>
    %11 = vector.shape_cast %10 : vector<1x128x512xbf16> to vector<128x512xbf16>
    %cst_14 = arith.constant dense<0.000000e+00> : vector<8x512xf32>
    %12 = tpu.matmul %9, %11, %cst_14 {dimension_numbers = #tpu.dot_dimension_numbers<[1], [0], [0], [1], [0, 0, 1, 1], [], []>} : vector<8x128xbf16>, vector<128x512xbf16>, vector<8x512xf32> -> vector<8x512xf32>
    %c0_15 = arith.constant 0 : index
    %c0_16 = arith.constant 0 : index
    %13 = vector.load %arg7[%c0_15, %c0_16] : memref<8x512xf32, #tpu.memory_space<vmem>>, vector<8x512xf32>
    %c0_17 = arith.constant 0 : index
    %c0_18 = arith.constant 0 : index
    %c0_19 = arith.constant 0 : index
    %14 = vector.load %arg5[%c0_17, %c0_18, %c0_19] : memref<3x1x512xf32, #tpu.memory_space<vmem>>, vector<1x1x512xf32>
    %15 = vector.shape_cast %14 : vector<1x1x512xf32> to vector<1x512xf32>
    %16 = vector.broadcast %15 : vector<1x512xf32> to vector<8x512xf32>
    %17 = arith.addf %12, %16 : vector<8x512xf32>
    %18 = arith.mulf %13, %17 : vector<8x512xf32>
    %19 = arith.addf %18, %4 : vector<8x512xf32>
    %20 = arith.truncf %19 : vector<8x512xf32> to vector<8x512xbf16>
    %c1 = arith.constant 1 : index
    %c0_20 = arith.constant 0 : index
    %c0_21 = arith.constant 0 : index
    %21 = vector.load %arg3[%c1, %c0_20, %c0_21] : memref<3x512x128xbf16, #tpu.memory_space<vmem>>, vector<1x512x128xbf16>
    %22 = vector.shape_cast %21 : vector<1x512x128xbf16> to vector<512x128xbf16>
    %cst_22 = arith.constant dense<0.000000e+00> : vector<8x128xf32>
    %23 = tpu.matmul %20, %22, %cst_22 {dimension_numbers = #tpu.dot_dimension_numbers<[1], [0], [0], [1], [0, 0, 1, 1], [], []>} : vector<8x512xbf16>, vector<512x128xbf16>, vector<8x128xf32> -> vector<8x128xf32>
    %24 = arith.truncf %23 : vector<8x128xf32> to vector<8x128xbf16>
    %c1_23 = arith.constant 1 : index
    %c0_24 = arith.constant 0 : index
    %c0_25 = arith.constant 0 : index
    %25 = vector.load %arg4[%c1_23, %c0_24, %c0_25] : memref<3x128x512xbf16, #tpu.memory_space<vmem>>, vector<1x128x512xbf16>
    %26 = vector.shape_cast %25 : vector<1x128x512xbf16> to vector<128x512xbf16>
    %cst_26 = arith.constant dense<0.000000e+00> : vector<8x512xf32>
    %27 = tpu.matmul %24, %26, %cst_26 {dimension_numbers = #tpu.dot_dimension_numbers<[1], [0], [0], [1], [0, 0, 1, 1], [], []>} : vector<8x128xbf16>, vector<128x512xbf16>, vector<8x512xf32> -> vector<8x512xf32>
    %c0_27 = arith.constant 0 : index
    %c0_28 = arith.constant 0 : index
    %28 = vector.load %arg7[%c0_27, %c0_28] : memref<8x512xf32, #tpu.memory_space<vmem>>, vector<8x512xf32>
    %c1_29 = arith.constant 1 : index
    %c0_30 = arith.constant 0 : index
    %c0_31 = arith.constant 0 : index
    %29 = vector.load %arg5[%c1_29, %c0_30, %c0_31] : memref<3x1x512xf32, #tpu.memory_space<vmem>>, vector<1x1x512xf32>
    %30 = vector.shape_cast %29 : vector<1x1x512xf32> to vector<1x512xf32>
    %31 = vector.broadcast %30 : vector<1x512xf32> to vector<8x512xf32>
    %32 = arith.addf %27, %31 : vector<8x512xf32>
    %33 = arith.mulf %28, %32 : vector<8x512xf32>
    %34 = arith.addf %33, %19 : vector<8x512xf32>
    %35 = arith.truncf %34 : vector<8x512xf32> to vector<8x512xbf16>
    %c2 = arith.constant 2 : index
    %c0_32 = arith.constant 0 : index
    %c0_33 = arith.constant 0 : index
    %36 = vector.load %arg3[%c2, %c0_32, %c0_33] : memref<3x512x128xbf16, #tpu.memory_space<vmem>>, vector<1x512x128xbf16>
    %37 = vector.shape_cast %36 : vector<1x512x128xbf16> to vector<512x128xbf16>
    %cst_34 = arith.constant dense<0.000000e+00> : vector<8x128xf32>
    %38 = tpu.matmul %35, %37, %cst_34 {dimension_numbers = #tpu.dot_dimension_numbers<[1], [0], [0], [1], [0, 0, 1, 1], [], []>} : vector<8x512xbf16>, vector<512x128xbf16>, vector<8x128xf32> -> vector<8x128xf32>
    %39 = arith.truncf %38 : vector<8x128xf32> to vector<8x128xbf16>
    %c2_35 = arith.constant 2 : index
    %c0_36 = arith.constant 0 : index
    %c0_37 = arith.constant 0 : index
    %40 = vector.load %arg4[%c2_35, %c0_36, %c0_37] : memref<3x128x512xbf16, #tpu.memory_space<vmem>>, vector<1x128x512xbf16>
    %41 = vector.shape_cast %40 : vector<1x128x512xbf16> to vector<128x512xbf16>
    %cst_38 = arith.constant dense<0.000000e+00> : vector<8x512xf32>
    %42 = tpu.matmul %39, %41, %cst_38 {dimension_numbers = #tpu.dot_dimension_numbers<[1], [0], [0], [1], [0, 0, 1, 1], [], []>} : vector<8x128xbf16>, vector<128x512xbf16>, vector<8x512xf32> -> vector<8x512xf32>
    %c0_39 = arith.constant 0 : index
    %c0_40 = arith.constant 0 : index
    %43 = vector.load %arg7[%c0_39, %c0_40] : memref<8x512xf32, #tpu.memory_space<vmem>>, vector<8x512xf32>
    %c2_41 = arith.constant 2 : index
    %c0_42 = arith.constant 0 : index
    %c0_43 = arith.constant 0 : index
    %44 = vector.load %arg5[%c2_41, %c0_42, %c0_43] : memref<3x1x512xf32, #tpu.memory_space<vmem>>, vector<1x1x512xf32>
    %45 = vector.shape_cast %44 : vector<1x1x512xf32> to vector<1x512xf32>
    %46 = vector.broadcast %45 : vector<1x512xf32> to vector<8x512xf32>
    %47 = arith.addf %42, %46 : vector<8x512xf32>
    %48 = arith.mulf %43, %47 : vector<8x512xf32>
    %49 = arith.addf %48, %34 : vector<8x512xf32>
    %c0_44 = arith.constant 0 : index
    %c0_45 = arith.constant 0 : index
    %50 = vector.load %arg6[%c0_44, %c0_45] : memref<8x512xf32, #tpu.memory_space<vmem>>, vector<8x512xf32>
    tpu.vector_store %arg6[%c0_44, %c0_45], %49 {strides = array<i32>} : memref<8x512xf32, #tpu.memory_space<vmem>>, vector<8x512xf32>,
    return
  }
  func.func @transform_0(%arg0: i32) -> (i32, i32) {
    %c0_i32 = arith.constant 0 : i32
    %c0_i32_0 = arith.constant 0 : i32
    return %arg0, %c0_i32 : i32, i32
  }
  func.func @transform_1(%arg0: i32) -> (i32, i32) {
    %c0_i32 = arith.constant 0 : i32
    %c0_i32_0 = arith.constant 0 : i32
    return %arg0, %c0_i32 : i32, i32
  }
  func.func @transform_2(%arg0: i32) -> (i32, i32, i32) {
    %c0_i32 = arith.constant 0 : i32
    %c0_i32_0 = arith.constant 0 : i32
    %c0_i32_1 = arith.constant 0 : i32
    %c0_i32_2 = arith.constant 0 : i32
    return %c0_i32, %c0_i32_0, %c0_i32_1 : i32, i32, i32
  }
  func.func @transform_3(%arg0: i32) -> (i32, i32, i32) {
    %c0_i32 = arith.constant 0 : i32
    %c0_i32_0 = arith.constant 0 : i32
    %c0_i32_1 = arith.constant 0 : i32
    %c0_i32_2 = arith.constant 0 : i32
    return %c0_i32, %c0_i32_0, %c0_i32_1 : i32, i32, i32
  }
  func.func @transform_4(%arg0: i32) -> (i32, i32, i32) {
    %c0_i32 = arith.constant 0 : i32
    %c0_i32_0 = arith.constant 0 : i32
    %c0_i32_1 = arith.constant 0 : i32
    %c0_i32_2 = arith.constant 0 : i32
    return %c0_i32, %c0_i32_0, %c0_i32_1 : i32, i32, i32
  }
  func.func @transform_5(%arg0: i32) -> (i32, i32) {
    %c0_i32 = arith.constant 0 : i32
    %c0_i32_0 = arith.constant 0 : i32
    return %arg0, %c0_i32 : i32, i32
  }
}

</mosaic_0001>

<bundles_post_ra>
// kernel: tpu_custom_call.1
= control target key start
LH: loop header
LB: loop body
LE: loop exit
PB: predicated region body
PF: predicated region fallthrough
CT: control target
= control target key end

     0   :  { %10 = vsyncpa [#allocation4], 0  ;;  %s2960_s0 = inlined_call_operand.hbm [shape: f32[8,128], index: 0, kind: input, shape index: {}]   ;;  %s2961_s1 = inlined_call_operand.hbm [shape: f32[8,384], index: 1, kind: input, shape index: {}]   ;;  %s2962_s2 = inlined_call_operand.hbm [shape: bf16[3,512,128], index: 2, kind: input, shape index: {}]   ;;  %s2963_s3 = inlined_call_operand.hbm [shape: bf16[3,128,512], index: 3, kind: input, shape index: {}]   ;;  %s2964_s4 = inlined_call_operand.vmem [shape: f32[3,1,512], index: 4, kind: input, shape index: {}]   ;;  %s2965_s5 = inlined_call_operand.hbm [shape: f32[8,512], index: 5, kind: output, shape index: {}]  }
   0x1   :  { %11 = vsyncpa [#allocation7], 0 }
   0x2   :  { %12 = vsyncpa [#allocation10], 0 }
   0x3   :  { %13 = vsyncpa [#allocation5], 0  ;;  %s2745_s18 = smov [#allocation6]   ;;  %s2746_s20 = smov [#allocation3]  }
   0x4   :  { %s30_s19 = sshll.u32 %s2745_s18, 4  ;;  %s20_s21 = sshll.u32 %s2746_s20, 4  ;;  %s31_s19 = int_to_ptr.vmem [resolvable:$true] %s30_s19  ;;  %s21_s21 = int_to_ptr.vmem [resolvable:$true] %s20_s21 }
   0x5   :  { %s2627_s24 = scalar_lea.hbm %s2961_s1, 384 }
   0x6   :  { %p2628_p0 = scmp.ne.s32.totalorder %s2961_s1, %s2627_s24  ;;  %p2631_p1 = scmp.lt.u32.totalorder %s2627_s24, %s2961_s1 }
   0x8   :  { %p2633_p2 = pnand %p2631_p1, %p2628_p0 }
   0xa   :  { %2636 = shalt.err (!%p2633_p2)
}
   0xb   :  { %s2637_s29 = scalar_lea.vmem %s31_s19, 384  ;;  %p2642_p4 = scmp.lt.s32.totalorder %s31_s19, %s31_s19 }
   0xc   :  { %p2638_p3 = scmp.ne.s32.totalorder %s31_s19, %s2637_s29  ;;  %p2643_p5 = scmp.lt.s32.totalorder %s2637_s29, %s2637_s29 }
   0xe   :  { %p2644_p6 = por %p2643_p5, %p2642_p4 }
  0x10   :  { %p2645_p7 = pnand %p2644_p6, %p2638_p3 }
  0x12   :  { %2648 = shalt.err (!%p2645_p7)
}
  0x13   :  { %33 = dma.hbm_to_vmem [thread:$0]  %s2961_s1, 384, %s31_s19, [#allocation7]  }
  0x14   :  { %s2649_s9 = scalar_lea.hbm %s2960_s0, 128 }
  0x15   :  { %p2650_p8 = scmp.ne.s32.totalorder %s2960_s0, %s2649_s9  ;;  %p2653_p9 = scmp.lt.u32.totalorder %s2649_s9, %s2960_s0 }
  0x17   :  { %p2655_p10 = pnand %p2653_p9, %p2650_p8 }
  0x19   :  { %2658 = shalt.err (!%p2655_p10)
}
  0x1a   :  { %s2659_s14 = scalar_lea.vmem %s21_s21, 128  ;;  %p2664_p12 = scmp.lt.s32.totalorder %s21_s21, %s21_s21 }
  0x1b   :  { %p2660_p11 = scmp.ne.s32.totalorder %s21_s21, %s2659_s14  ;;  %p2665_p13 = scmp.lt.s32.totalorder %s2659_s14, %s2659_s14 }
  0x1d   :  { %p2666_p0 = por %p2665_p13, %p2664_p12 }
  0x1f   :  { %p2667_p1 = pnand %p2666_p0, %p2660_p11 }
  0x21   :  { %2670 = shalt.err (!%p2667_p1)
}
  0x22   :  { %23 = dma.hbm_to_vmem [thread:$0]  %s2960_s0, 128, %s21_s21, [#allocation4]  }
  0x23   :  { %s2747_s16 = smov [#allocation8]   ;;  %s2671_s20 = scalar_lea.hbm %s2962_s2, 12288 }
  0x24   :  { %s39_s17 = sshll.u32 %s2747_s16, 4  ;;  %p2672_p2 = scmp.ne.s32.totalorder %s2962_s2, %s2671_s20  ;;  %s40_s17 = int_to_ptr.vmem [resolvable:$true] %s39_s17 }
  0x25   :  { %p2675_p3 = scmp.lt.u32.totalorder %s2671_s20, %s2962_s2 }
  0x27   :  { %p2677_p4 = pnand %p2675_p3, %p2672_p2 }
  0x29   :  { %2680 = shalt.err (!%p2677_p4)
}
  0x2a   :  { %s2681_s26 = scalar_lea.vmem %s40_s17, 12288  ;;  %p2686_p6 = scmp.lt.s32.totalorder %s40_s17, %s40_s17 }
  0x2b   :  { %p2682_p5 = scmp.ne.s32.totalorder %s40_s17, %s2681_s26  ;;  %p2687_p7 = scmp.lt.s32.totalorder %s2681_s26, %s2681_s26 }
  0x2d   :  { %p2688_p8 = por %p2687_p7, %p2686_p6 }
  0x2f   :  { %p2689_p9 = pnand %p2688_p8, %p2682_p5 }
  0x31   :  { %2692 = shalt.err (!%p2689_p9)
}
  0x32   :  { %s2748_s0 = smov 64   ;;  %s2749_s21 = smov 4  }
  0x33   :  { %45 = dma.hbm_to_vmem [thread:$0]  %s2962_s2, 12288, %s40_s17, [#allocation7], %s2748_s0, %s2748_s0, %s2749_s21  }
  0x34   :  { %s2750_s29 = smov [#allocation9]   ;;  %s2693_s8 = scalar_lea.hbm %s2963_s3, 12288 }
  0x35   :  { %s51_s30 = sshll.u32 %s2750_s29, 4  ;;  %p2694_p10 = scmp.ne.s32.totalorder %s2963_s3, %s2693_s8  ;;  %s52_s30 = int_to_ptr.vmem [resolvable:$true] %s51_s30 }
  0x36   :  { %p2697_p11 = scmp.lt.u32.totalorder %s2693_s8, %s2963_s3 }
  0x38   :  { %p2699_p12 = pnand %p2697_p11, %p2694_p10 }
  0x3a   :  { %2702 = shalt.err (!%p2699_p12)
}
  0x3b   :  { %s2703_s13 = scalar_lea.vmem %s52_s30, 12288  ;;  %p2708_p0 = scmp.lt.s32.totalorder %s52_s30, %s52_s30 }
  0x3c   :  { %p2704_p13 = scmp.ne.s32.totalorder %s52_s30, %s2703_s13  ;;  %p2709_p1 = scmp.lt.s32.totalorder %s2703_s13, %s2703_s13 }
  0x3e   :  { %p2710_p2 = por %p2709_p1, %p2708_p0 }
  0x40   :  { %p2711_p3 = pnand %p2710_p2, %p2704_p13 }
  0x42   :  { %2714 = shalt.err (!%p2711_p3)
}
  0x43   :  { %s2751_s2 = smov 256   ;;  %s2752_s14 = smov 16  }
  0x44   :  { %57 = dma.hbm_to_vmem [thread:$0]  %s2963_s3, 12288, %s52_s30, [#allocation10], %s2751_s2, %s2751_s2, %s2752_s14  }
  0x45   :  { %2737 = dma.done.wait [#allocation4], 128  }
  0x46   :  { %2738 = vsyncadd [#allocation4], 4294967168 }
  0x47   :  { %2739 = dma.done.wait [#allocation7], 12672  }
  0x48   :  { %2740 = vsyncadd [#allocation7], 4294954624 }
  0x49   :  { %2741 = dma.done.wait [#allocation10], 12288  }
  0x4a   :  { %2742 = vsyncadd [#allocation10], 4294955008  ;;  %v2383_v0 = vld [vmem:[#allocation8 + $0x40] sm:$0xff]   ;;  %v2387_v4 = vld [vmem:[#allocation8 + $0x48] sm:$0xff]  }
  0x4b   :  { %v2384_v1 = vld [vmem:[#allocation8 + $0xc0] sm:$0xff]   ;;  %2241 = vmatprep.subr.bf16.mxu0 %v2383_v0  ;;  %v2388_v5 = vld [vmem:[#allocation8 + $0xc8] sm:$0xff]   ;;  %v2391_v8 = vld [vmem:[#allocation8 + $0x50] sm:$0xff]  }
  0x4c   :  { %v2385_v2 = vld [vmem:[#allocation8] sm:$0xff]   ;;  %2263 = vmatprep.subr.bf16.mxu1 %v2384_v1  ;;  %v2389_v6 = vld [vmem:[#allocation8 + $0x8] sm:$0xff]   ;;  %v2392_v9 = vld [vmem:[#allocation8 + $0xd0] sm:$0xff]  }
  0x4d   :  { %v2386_v3 = vld [vmem:[#allocation8 + $0x80] sm:$0xff]   ;;  %2242 = vmatpush3.bf16.msra.mxu0 %v2385_v2  ;;  %v2390_v7 = vld [vmem:[#allocation8 + $0x88] sm:$0xff]   ;;  %v2393_v10 = vld [vmem:[#allocation8 + $0x10] sm:$0xff]  }
  0x4e   :  { %2264 = vmatpush3.bf16.msra.mxu1 %v2386_v3  ;;  %2243 = vmatprep.subr.bf16.mxu0 %v2387_v4  ;;  %v2394_v11 = vld [vmem:[#allocation8 + $0x90] sm:$0xff]   ;;  %v2395_v12 = vld [vmem:[#allocation8 + $0x58] sm:$0xff]   ;;  %v2399_v16 = vld [vmem:[#allocation8 + $0x60] sm:$0xff]  }
  0x4f   :  { %2265 = vmatprep.subr.bf16.mxu1 %v2388_v5  ;;  %v2396_v13 = vld [vmem:[#allocation8 + $0xd8] sm:$0xff]   ;;  %v2400_v17 = vld [vmem:[#allocation8 + $0xe0] sm:$0xff]   ;;  %v2403_v20 = vld [vmem:[#allocation8 + $0x68] sm:$0xff]  }
  0x50   :  { %v2397_v14 = vld [vmem:[#allocation8 + $0x18] sm:$0xff]   ;;  %v2401_v18 = vld [vmem:[#allocation8 + $0x20] sm:$0xff]   ;;  %v2404_v21 = vld [vmem:[#allocation8 + $0xe8] sm:$0xff]  }
  0x51   :  { %2244 = vmatpush3.bf16.msra.mxu0 %v2389_v6  ;;  %v2398_v15 = vld [vmem:[#allocation8 + $0x98] sm:$0xff]   ;;  %v2402_v19 = vld [vmem:[#allocation8 + $0xa0] sm:$0xff]   ;;  %v2405_v22 = vld [vmem:[#allocation8 + $0x28] sm:$0xff]  }
  0x52   :  { %2266 = vmatpush3.bf16.msra.mxu1 %v2390_v7  ;;  %2245 = vmatprep.subr.bf16.mxu0 %v2391_v8  ;;  %v2406_v23 = vld [vmem:[#allocation8 + $0xa8] sm:$0xff]   ;;  %v2407_v24 = vld [vmem:[#allocation8 + $0x70] sm:$0xff]   ;;  %v2411_v28 = vld [vmem:[#allocation8 + $0x78] sm:$0xff]   ;;  %v2753_v8 = vmov 0  }
  0x53   :  { %2267 = vmatprep.subr.bf16.mxu1 %v2392_v9  ;;  %v2408_v25 = vld [vmem:[#allocation8 + $0xf0] sm:$0xff]   ;;  %v2412_v29 = vld [vmem:[#allocation8 + $0xf8] sm:$0xff]   ;;  %v2833_v32 = vld [vmem:[#allocation6] sm:$0xff] }
  0x54   :  { %v2409_v26 = vld [vmem:[#allocation8 + $0x30] sm:$0xff]   ;;  %v2413_v30 = vld [vmem:[#allocation8 + $0x38] sm:$0xff]   ;;  %v2837_v34 = vld [vmem:[#allocation3] sm:$0xff]  ;;  %v86_v35 = vpack.c.bf16 %v2833_v32, %v2833_v32 }
  0x55   :  { %2246 = vmatpush3.bf16.msra.mxu0 %v2393_v10  ;;  %v2410_v27 = vld [vmem:[#allocation8 + $0xb0] sm:$0xff]   ;;  %v2414_v31 = vld [vmem:[#allocation8 + $0xb8] sm:$0xff]   ;;  %v85_v37 = vpack.c.bf16 %v2837_v34, %v2837_v34  ;;  %v2463_v9 = vld [vmem:[#allocation8 + $0x140] sm:$0xff]  }
  0x56   :  { %2268 = vmatpush3.bf16.msra.mxu1 %v2394_v11  ;;  %2247 = vmatprep.subr.bf16.mxu0 %v2395_v12  ;;  %v2835_v33 = vld [vmem:[#allocation6 + $0x10] sm:$0xff]  ;;  %v2845_v38 = vld [vmem:[#allocation6 + $0x8] sm:$0xff]  ;;  %v2464_v10 = vld [vmem:[#allocation8 + $0x1c0] sm:$0xff]  }
  0x57   :  { %2269 = vmatprep.subr.bf16.mxu1 %v2396_v13  ;;  %v88_v36 = vpack.c.bf16 %v2835_v33, %v2835_v33  ;;  %v87_v39 = vpack.c.bf16 %v2845_v38, %v2845_v38  ;;  %v2415_v40 = vld [vmem:[#allocation9] ss:$16 sps:$4 sm:$0xff]   ;;  %v2417_v41 = vld [vmem:[#allocation9 + $0x4] ss:$16 sps:$4 sm:$0xff]   ;;  %377 = vmatprep.mubr.bf16.mxu0 %v86_v35  ;;  %v2418_v42 = vld [vmem:[#allocation9 + $0x8] ss:$16 sps:$4 sm:$0xff]  }
  0x58   :  { %v2420_v43 = vld [vmem:[#allocation9 + $0xc] ss:$16 sps:$4 sm:$0xff]   ;;  %v2421_v44 = vld [vmem:[#allocation9 + $0x20] ss:$16 sps:$4 sm:$0xff]   ;;  %v2423_v45 = vld [vmem:[#allocation9 + $0x24] ss:$16 sps:$4 sm:$0xff]  }
  0x59   :  { %2248 = vmatpush3.bf16.msra.mxu0 %v2397_v14  ;;  %417 = vmatprep.mubr.bf16.mxu1 %v88_v36  ;;  %v2424_v46 = vld [vmem:[#allocation9 + $0x28] ss:$16 sps:$4 sm:$0xff]   ;;  %v2426_v47 = vld [vmem:[#allocation9 + $0x2c] ss:$16 sps:$4 sm:$0xff]   ;;  %v2429_v48 = vld [vmem:[#allocation9 + $0x44] ss:$16 sps:$4 sm:$0xff]  }
  0x5a   :  { %2270 = vmatpush3.bf16.msra.mxu1 %v2398_v15  ;;  %2249 = vmatprep.subr.bf16.mxu0 %v2399_v16  ;;  %v2432_v49 = vld [vmem:[#allocation9 + $0x4c] ss:$16 sps:$4 sm:$0xff]   ;;  %v2427_v50 = vld [vmem:[#allocation9 + $0x40] ss:$16 sps:$4 sm:$0xff]   ;;  %v2430_v51 = vld [vmem:[#allocation9 + $0x48] ss:$16 sps:$4 sm:$0xff]  }
  0x5b   :  { %2271 = vmatprep.subr.bf16.mxu1 %v2400_v17  ;;  %v2435_v52 = vld [vmem:[#allocation9 + $0x64] ss:$16 sps:$4 sm:$0xff]   ;;  %v2438_v53 = vld [vmem:[#allocation9 + $0x6c] ss:$16 sps:$4 sm:$0xff]   ;;  %v2433_v54 = vld [vmem:[#allocation9 + $0x60] ss:$16 sps:$4 sm:$0xff]  }
  0x5c   :  { %v2436_v55 = vld [vmem:[#allocation9 + $0x68] ss:$16 sps:$4 sm:$0xff]   ;;  %v2441_v56 = vld [vmem:[#allocation9 + $0x84] ss:$16 sps:$4 sm:$0xff]   ;;  %v2444_v57 = vld [vmem:[#allocation9 + $0x8c] ss:$16 sps:$4 sm:$0xff]  }
  0x5d   :  { %2250 = vmatpush3.bf16.msra.mxu0 %v2401_v18  ;;  %v2439_v58 = vld [vmem:[#allocation9 + $0x80] ss:$16 sps:$4 sm:$0xff]   ;;  %v2442_v59 = vld [vmem:[#allocation9 + $0x88] ss:$16 sps:$4 sm:$0xff]   ;;  %v2447_v60 = vld [vmem:[#allocation9 + $0xa4] ss:$16 sps:$4 sm:$0xff]  }
  0x5e   :  { %2272 = vmatpush3.bf16.msra.mxu1 %v2402_v19  ;;  %2251 = vmatprep.subr.bf16.mxu0 %v2403_v20  ;;  %v2450_v61 = vld [vmem:[#allocation9 + $0xac] ss:$16 sps:$4 sm:$0xff]   ;;  %v2445_v62 = vld [vmem:[#allocation9 + $0xa0] ss:$16 sps:$4 sm:$0xff]   ;;  %v2448_v63 = vld [vmem:[#allocation9 + $0xa8] ss:$16 sps:$4 sm:$0xff]  }
  0x5f   :  { %2273 = vmatprep.subr.bf16.mxu1 %v2404_v21  ;;  %v2453_v0 = vld [vmem:[#allocation9 + $0xc4] ss:$16 sps:$4 sm:$0xff]   ;;  %v2456_v1 = vld [vmem:[#allocation9 + $0xcc] ss:$16 sps:$4 sm:$0xff]   ;;  %v2451_v2 = vld [vmem:[#allocation9 + $0xc0] ss:$16 sps:$4 sm:$0xff]  }
  0x60   :  { %v2454_v3 = vld [vmem:[#allocation9 + $0xc8] ss:$16 sps:$4 sm:$0xff]   ;;  %v2459_v4 = vld [vmem:[#allocation9 + $0xe4] ss:$16 sps:$4 sm:$0xff]   ;;  %v2462_v5 = vld [vmem:[#allocation9 + $0xec] ss:$16 sps:$4 sm:$0xff]  }
  0x61   :  { %2252 = vmatpush3.bf16.msra.mxu0 %v2405_v22  ;;  %v2457_v6 = vld [vmem:[#allocation9 + $0xe0] ss:$16 sps:$4 sm:$0xff]   ;;  %v2460_v7 = vld [vmem:[#allocation9 + $0xe8] ss:$16 sps:$4 sm:$0xff]  }
  0x62   :  { %2274 = vmatpush3.bf16.msra.mxu1 %v2406_v23  ;;  %2253 = vmatprep.subr.bf16.mxu0 %v2407_v24  ;;  %v2465_v22 = vld [vmem:[#allocation8 + $0x100] sm:$0xff]   ;;  %v2474_v35 = vld [vmem:[#allocation8 + $0x190] sm:$0xff]   ;;  %v2475_v36 = vld [vmem:[#allocation8 + $0x158] sm:$0xff]  }
  0x63   :  { %2275 = vmatprep.subr.bf16.mxu1 %v2408_v25  ;;  %v2466_v23 = vld [vmem:[#allocation8 + $0x180] sm:$0xff]   ;;  %v2467_v25 = vld [vmem:[#allocation8 + $0x148] sm:$0xff]  }
  0x65   :  { %2254 = vmatpush3.bf16.msra.mxu0 %v2409_v26  ;;  %v2468_v26 = vld [vmem:[#allocation8 + $0x1c8] sm:$0xff]  }
  0x66   :  { %2276 = vmatpush3.bf16.msra.mxu1 %v2410_v27  ;;  %2255 = vmatprep.subr.bf16.mxu0 %v2411_v28  ;;  %v2469_v27 = vld [vmem:[#allocation8 + $0x108] sm:$0xff]  }
  0x67   :  { %2277 = vmatprep.subr.bf16.mxu1 %v2412_v29  ;;  %v2470_v28 = vld [vmem:[#allocation8 + $0x188] sm:$0xff]   ;;  %v2471_v29 = vld [vmem:[#allocation8 + $0x150] sm:$0xff]  }
  0x69   :  { %2256 = vmatpush3.bf16.msra.mxu0 %v2413_v30  ;;  %v2472_v30 = vld [vmem:[#allocation8 + $0x1d0] sm:$0xff]  }
  0x6a   :  { %2278 = vmatpush3.bf16.msra.mxu1 %v2414_v31  ;;  %640 = vmatprep.subr.bf16.mxu0 %v2417_v41  ;;  %v2473_v31 = vld [vmem:[#allocation8 + $0x110] sm:$0xff]   ;;  %v2479_v41 = vld [vmem:[#allocation8 + $0x160] sm:$0xff]  }
  0x6b   :  { %681 = vmatprep.subr.bf16.mxu1 %v2420_v43  ;;  %v2481_v43 = vld [vmem:[#allocation8 + $0x120] sm:$0xff]  }
  0x6c   :  { %378 = vmatmul.mubr.bf16.vlgmr.msra.gmra.mrb[0].mxu0 %v85_v37  ;;  %v2476_v37 = vld [vmem:[#allocation8 + $0x1d8] sm:$0xff]  }
  0x6d   :  { %418 = vmatmul.mubr.bf16.vlgmr.msra.gmra.mrb[0].mxu1 %v87_v39  ;;  %641 = vmatpush1.bf16.msra.mxu0 %v2415_v40  ;;  %v2477_v39 = vld [vmem:[#allocation8 + $0x118] sm:$0xff]  }
  0x6e   :  { %682 = vmatpush1.bf16.msra.mxu1 %v2418_v42  ;;  %642 = vmatprep.subr.bf16.mxu0 %v2423_v45  ;;  %v2478_v40 = vld [vmem:[#allocation8 + $0x198] sm:$0xff]   ;;  %v2480_v42 = vld [vmem:[#allocation8 + $0x1e0] sm:$0xff]   ;;  %v2483_v45 = vld [vmem:[#allocation8 + $0x168] sm:$0xff]  }
  0x6f   :  { %683 = vmatprep.subr.bf16.mxu1 %v2426_v47  ;;  %672 = vmatprep.mubr.bf16.mxu0 %v2753_v8  ;;  %v2485_v47 = vld [vmem:[#allocation8 + $0x128] sm:$0xff]  }
  0x70   :  { %713 = vmatprep.mubr.bf16.mxu1 %v2753_v8 }
  0x71   :  { %643 = vmatpush1.bf16.msra.mxu0 %v2421_v44  ;;  %v2482_v44 = vld [vmem:[#allocation8 + $0x1a0] sm:$0xff]  }
  0x72   :  { %684 = vmatpush1.bf16.msra.mxu1 %v2424_v46  ;;  %644 = vmatprep.subr.bf16.mxu0 %v2429_v48  ;;  %v2484_v46 = vld [vmem:[#allocation8 + $0x1e8] sm:$0xff]  }
  0x73   :  { %685 = vmatprep.subr.bf16.mxu1 %v2432_v49  ;;  %v2486_v48 = vld [vmem:[#allocation8 + $0x1a8] sm:$0xff]   ;;  %v2487_v49 = vld [vmem:[#allocation8 + $0x170] sm:$0xff]  }
  0x75   :  { %645 = vmatpush1.bf16.msra.mxu0 %v2427_v50  ;;  %v2488_v50 = vld [vmem:[#allocation8 + $0x1f0] sm:$0xff]  }
  0x76   :  { %686 = vmatpush1.bf16.msra.mxu1 %v2430_v51  ;;  %646 = vmatprep.subr.bf16.mxu0 %v2435_v52  ;;  %v2489_v51 = vld [vmem:[#allocation8 + $0x130] sm:$0xff]  }
  0x77   :  { %687 = vmatprep.subr.bf16.mxu1 %v2438_v53  ;;  %v2490_v52 = vld [vmem:[#allocation8 + $0x1b0] sm:$0xff]   ;;  %v2491_v53 = vld [vmem:[#allocation8 + $0x178] sm:$0xff]  }
  0x79   :  { %647 = vmatpush1.bf16.msra.mxu0 %v2433_v54  ;;  %v2492_v54 = vld [vmem:[#allocation8 + $0x1f8] sm:$0xff]  }
  0x7a   :  { %688 = vmatpush1.bf16.msra.mxu1 %v2436_v55  ;;  %648 = vmatprep.subr.bf16.mxu0 %v2441_v56  ;;  %v2493_v55 = vld [vmem:[#allocation8 + $0x138] sm:$0xff]  }
  0x7b   :  { %689 = vmatprep.subr.bf16.mxu1 %v2444_v57  ;;  %v2494_v56 = vld [vmem:[#allocation8 + $0x1b8] sm:$0xff]   ;;  %v2497_v57 = vld [vmem:[#allocation9 + $0x104] ss:$16 sps:$4 sm:$0xff]  }
  0x7d   :  { %649 = vmatpush1.bf16.msra.mxu0 %v2439_v58  ;;  %v2500_v58 = vld [vmem:[#allocation9 + $0x10c] ss:$16 sps:$4 sm:$0xff]  }
  0x7e   :  { %690 = vmatpush1.bf16.msra.mxu1 %v2442_v59  ;;  %650 = vmatprep.subr.bf16.mxu0 %v2447_v60  ;;  %v460_v59 = vlaneseq }
  0x7f   :  { %691 = vmatprep.subr.bf16.mxu1 %v2450_v61 }
  0x80   :  { %v461_v60 = vshrl.u32 %v460_v59, 7  ;;  %v2537_v59 = vld [vmem:[#allocation9 + $0x1e0] ss:$16 sps:$4 sm:$0xff]  }
  0x81   :  { %651 = vmatpush1.bf16.msra.mxu0 %v2445_v62 }
  0x82   :  { %692 = vmatpush1.bf16.msra.mxu1 %v2448_v63  ;;  %652 = vmatprep.subr.bf16.mxu0 %v2453_v0  ;;  %v2851_v61 = vsub.s32 0, %v461_v60  ;;  %v2853_v62 = vsub.s32 2, %v461_v60  ;;  %v458_v63 = vld [vmem:[%s2964_s4] sm:$0xf]  ;;  %v2858_v0 = vsub.s32 1, %v461_v60 }
  0x83   :  { %693 = vmatprep.subr.bf16.mxu1 %v2456_v1  ;;  %v2860_v1 = vsub.s32 3, %v461_v60  ;;  %v2540_v60 = vld [vmem:[#allocation9 + $0x1e8] ss:$16 sps:$4 sm:$0xff]  }
  0x85   :  { %653 = vmatpush1.bf16.msra.mxu0 %v2451_v2  ;;  %v463_v2 = vrot.slane %v458_v63, %v2851_v61 }
  0x86   :  { %694 = vmatpush1.bf16.msra.mxu1 %v2454_v3  ;;  %654 = vmatprep.subr.bf16.mxu0 %v2459_v4  ;;  %v471_v3 = vrot.slane %v458_v63, %v2853_v62  ;;  %v467_v4 = vrot.slane %v458_v63, %v2858_v0 }
  0x87   :  { %695 = vmatprep.subr.bf16.mxu1 %v2462_v5  ;;  %v475_v5 = vrot.slane %v458_v63, %v2860_v1  ;;  %v2543_v63 = vld [vmem:[#allocation8 + $0x240] sm:$0xff]  }
  0x89   :  { %655 = vmatpush1.bf16.msra.mxu0 %v2457_v6 }
  0x8a   :  { %696 = vmatpush1.bf16.msra.mxu1 %v2460_v7  ;;  %2285 = vmatprep.subr.bf16.mxu0 %v2463_v9 }
  0x8b   :  { %2307 = vmatprep.subr.bf16.mxu1 %v2464_v10 }
 0x13f   :  { %v2257_v11 = vpop.f32.mrb[0].mxu0 }
 0x140   :  { %v2279_v12 = vpop.f32.mrb[0].mxu1  ;;  %v2258_v13 = vpop.f32.mrb[1].mxu0 }
 0x141   :  { %v2280_v14 = vpop.f32.mrb[1].mxu1  ;;  %v2259_v15 = vadd.f32 %v2258_v13, %v2257_v11  ;;  %v2260_v17 = vpop.f32.mrb[2].mxu0 }
 0x142   :  { %v2281_v16 = vadd.f32 %v2280_v14, %v2279_v12  ;;  %v2282_v18 = vpop.f32.mrb[2].mxu1  ;;  %v2261_v19 = vpop.f32.mrb[3].mxu0 }
 0x143   :  { %v2283_v20 = vpop.f32.mrb[3].mxu1 }
 0x144   :  { %v420_v21 = vadd.f32 %v2281_v16, %v2259_v15 }
 0x146   :  { %v425_v24 = vpack.c.bf16 %v420_v21, %v420_v21 }
 0x148   :  { %673 = vmatmul.mubr.bf16.vlgmr.msra.gmra.mrb[4].mxu0 %v425_v24  ;;  %714 = vmatmul.mubr.bf16.vlgmr.msra.gmra.mrb[4].mxu1 %v425_v24 }
 0x149   :  { %2286 = vmatpush3.bf16.msra.mxu0 %v2465_v22  ;;  %2308 = vmatpush3.bf16.msra.mxu1 %v2466_v23 }
 0x14a   :  { %2287 = vmatprep.subr.bf16.mxu0 %v2467_v25  ;;  %2309 = vmatprep.subr.bf16.mxu1 %v2468_v26 }
 0x14d   :  { %2288 = vmatpush3.bf16.msra.mxu0 %v2469_v27  ;;  %2310 = vmatpush3.bf16.msra.mxu1 %v2470_v28 }
 0x14e   :  { %2289 = vmatprep.subr.bf16.mxu0 %v2471_v29  ;;  %2311 = vmatprep.subr.bf16.mxu1 %v2472_v30  ;;  %v2495_v29 = vld [vmem:[#allocation9 + $0x100] ss:$16 sps:$4 sm:$0xff]   ;;  %v2498_v30 = vld [vmem:[#allocation9 + $0x108] ss:$16 sps:$4 sm:$0xff]  }
 0x151   :  { %2290 = vmatpush3.bf16.msra.mxu0 %v2473_v31  ;;  %2312 = vmatpush3.bf16.msra.mxu1 %v2474_v35  ;;  %v2503_v31 = vld [vmem:[#allocation9 + $0x124] ss:$16 sps:$4 sm:$0xff]   ;;  %v2504_v35 = vld [vmem:[#allocation9 + $0x128] ss:$16 sps:$4 sm:$0xff]  }
 0x152   :  { %2291 = vmatprep.subr.bf16.mxu0 %v2475_v36  ;;  %2313 = vmatprep.subr.bf16.mxu1 %v2476_v37  ;;  %v2509_v36 = vld [vmem:[#allocation9 + $0x144] ss:$16 sps:$4 sm:$0xff]   ;;  %v2512_v37 = vld [vmem:[#allocation9 + $0x14c] ss:$16 sps:$4 sm:$0xff]  }
 0x155   :  { %2292 = vmatpush3.bf16.msra.mxu0 %v2477_v39  ;;  %2314 = vmatpush3.bf16.msra.mxu1 %v2478_v40  ;;  %v2507_v39 = vld [vmem:[#allocation9 + $0x140] ss:$16 sps:$4 sm:$0xff]   ;;  %v2510_v40 = vld [vmem:[#allocation9 + $0x148] ss:$16 sps:$4 sm:$0xff]  }
 0x156   :  { %2293 = vmatprep.subr.bf16.mxu0 %v2479_v41  ;;  %2315 = vmatprep.subr.bf16.mxu1 %v2480_v42  ;;  %v2515_v41 = vld [vmem:[#allocation9 + $0x164] ss:$16 sps:$4 sm:$0xff]   ;;  %v2518_v42 = vld [vmem:[#allocation9 + $0x16c] ss:$16 sps:$4 sm:$0xff]  }
 0x159   :  { %2294 = vmatpush3.bf16.msra.mxu0 %v2481_v43  ;;  %2316 = vmatpush3.bf16.msra.mxu1 %v2482_v44  ;;  %v2513_v43 = vld [vmem:[#allocation9 + $0x160] ss:$16 sps:$4 sm:$0xff]   ;;  %v2516_v44 = vld [vmem:[#allocation9 + $0x168] ss:$16 sps:$4 sm:$0xff]  }
 0x15a   :  { %2295 = vmatprep.subr.bf16.mxu0 %v2483_v45  ;;  %2317 = vmatprep.subr.bf16.mxu1 %v2484_v46  ;;  %v2521_v45 = vld [vmem:[#allocation9 + $0x184] ss:$16 sps:$4 sm:$0xff]   ;;  %v2524_v46 = vld [vmem:[#allocation9 + $0x18c] ss:$16 sps:$4 sm:$0xff]  }
 0x15d   :  { %2296 = vmatpush3.bf16.msra.mxu0 %v2485_v47  ;;  %2318 = vmatpush3.bf16.msra.mxu1 %v2486_v48  ;;  %v2519_v47 = vld [vmem:[#allocation9 + $0x180] ss:$16 sps:$4 sm:$0xff]   ;;  %v2522_v48 = vld [vmem:[#allocation9 + $0x188] ss:$16 sps:$4 sm:$0xff]  }
 0x15e   :  { %2297 = vmatprep.subr.bf16.mxu0 %v2487_v49  ;;  %2319 = vmatprep.subr.bf16.mxu1 %v2488_v50  ;;  %v2527_v49 = vld [vmem:[#allocation9 + $0x1a4] ss:$16 sps:$4 sm:$0xff]   ;;  %v2530_v50 = vld [vmem:[#allocation9 + $0x1ac] ss:$16 sps:$4 sm:$0xff]  }
 0x161   :  { %2298 = vmatpush3.bf16.msra.mxu0 %v2489_v51  ;;  %2320 = vmatpush3.bf16.msra.mxu1 %v2490_v52  ;;  %v2525_v51 = vld [vmem:[#allocation9 + $0x1a0] ss:$16 sps:$4 sm:$0xff]   ;;  %v2528_v52 = vld [vmem:[#allocation9 + $0x1a8] ss:$16 sps:$4 sm:$0xff]  }
 0x162   :  { %2299 = vmatprep.subr.bf16.mxu0 %v2491_v53  ;;  %2321 = vmatprep.subr.bf16.mxu1 %v2492_v54  ;;  %v2533_v53 = vld [vmem:[#allocation9 + $0x1c4] ss:$16 sps:$4 sm:$0xff]   ;;  %v2536_v54 = vld [vmem:[#allocation9 + $0x1cc] ss:$16 sps:$4 sm:$0xff]  }
 0x165   :  { %2300 = vmatpush3.bf16.msra.mxu0 %v2493_v55  ;;  %2322 = vmatpush3.bf16.msra.mxu1 %v2494_v56  ;;  %v2531_v55 = vld [vmem:[#allocation9 + $0x1c0] ss:$16 sps:$4 sm:$0xff]   ;;  %v2534_v56 = vld [vmem:[#allocation9 + $0x1c8] ss:$16 sps:$4 sm:$0xff]  }
 0x166   :  { %1288 = vmatprep.subr.bf16.mxu0 %v2497_v57  ;;  %1329 = vmatprep.subr.bf16.mxu1 %v2500_v58  ;;  %v2539_v57 = vld [vmem:[#allocation9 + $0x1e4] ss:$16 sps:$4 sm:$0xff]   ;;  %v2542_v58 = vld [vmem:[#allocation9 + $0x1ec] ss:$16 sps:$4 sm:$0xff]  }
 0x21b   :  { %v674_v6 = vpop.f32.mrb[4].mxu0  ;;  %v715_v7 = vpop.f32.mrb[4].mxu1 }
 0x21c   :  { %v675_v9 = vadd.f32 %v674_v6, %v463_v2  ;;  %v716_v10 = vadd.f32 %v715_v7, %v471_v3  ;;  %v676_v11 = vpop.f32.mrb[5].mxu0  ;;  %v717_v12 = vpop.f32.mrb[5].mxu1  ;;  %v2544_v2 = vld [vmem:[#allocation8 + $0x2c0] sm:$0xff]  }
 0x21d   :  { %v677_v13 = vadd.f32 %v676_v11, %v467_v4  ;;  %v718_v14 = vadd.f32 %v717_v12, %v475_v5  ;;  %v678_v15 = vpop.f32.mrb[6].mxu0  ;;  %v719_v16 = vpop.f32.mrb[6].mxu1 }
 0x21e   :  { %v722_v17 = vmul.f32 %v675_v9, %v2837_v34  ;;  %v724_v18 = vmul.f32 %v716_v10, %v2845_v38  ;;  %v679_v19 = vpop.f32.mrb[7].mxu0  ;;  %v720_v20 = vpop.f32.mrb[7].mxu1  ;;  %v2545_v15 = vld [vmem:[#allocation8 + $0x200] sm:$0xff]  }
 0x21f   :  { %v723_v21 = vmul.f32 %v677_v13, %v2833_v32  ;;  %v725_v22 = vmul.f32 %v718_v14, %v2835_v33  ;;  %v2546_v16 = vld [vmem:[#allocation8 + $0x280] sm:$0xff]   ;;  %v2548_v19 = vld [vmem:[#allocation8 + $0x2c8] sm:$0xff]  }
 0x220   :  { %v2871_v23 = vadd.f32 %v722_v17, %v2837_v34  ;;  %v2874_v24 = vadd.f32 %v724_v18, %v2845_v38  ;;  %v2547_v18 = vld [vmem:[#allocation8 + $0x248] sm:$0xff]  }
 0x221   :  { %v2877_v25 = vadd.f32 %v723_v21, %v2833_v32  ;;  %v2880_v26 = vadd.f32 %v725_v22, %v2835_v33  ;;  %v2506_v32 = vld [vmem:[#allocation9 + $0x12c] ss:$16 sps:$4 sm:$0xff]   ;;  %v2501_v33 = vld [vmem:[#allocation9 + $0x120] ss:$16 sps:$4 sm:$0xff]  }
 0x222   :  { %v730_v34 = vpack.c.bf16 %v2871_v23, %v2871_v23  ;;  %v732_v38 = vpack.c.bf16 %v2874_v24, %v2874_v24  ;;  %v2549_v20 = vld [vmem:[#allocation8 + $0x208] sm:$0xff]   ;;  %v2551_v22 = vld [vmem:[#allocation8 + $0x250] sm:$0xff]  }
 0x223   :  { %v731_v27 = vpack.c.bf16 %v2877_v25, %v2877_v25  ;;  %v733_v28 = vpack.c.bf16 %v2880_v26, %v2880_v26  ;;  %v2550_v21 = vld [vmem:[#allocation8 + $0x288] sm:$0xff]  }
 0x225   :  { %1023 = vmatprep.mubr.bf16.mxu0 %v731_v27  ;;  %1063 = vmatprep.mubr.bf16.mxu1 %v733_v28  ;;  %v2552_v27 = vld [vmem:[#allocation8 + $0x2d0] sm:$0xff]  }
 0x226   :  { %1024 = vmatmul.mubr.bf16.vlgmr.msra.gmra.mrb[8].mxu0 %v730_v34  ;;  %1064 = vmatmul.mubr.bf16.vlgmr.msra.gmra.mrb[8].mxu1 %v732_v38  ;;  %v2553_v28 = vld [vmem:[#allocation8 + $0x210] sm:$0xff]   ;;  %v2556_v34 = vld [vmem:[#allocation8 + $0x2d8] sm:$0xff]  }
 0x227   :  { %1289 = vmatpush1.bf16.msra.mxu0 %v2495_v29  ;;  %1330 = vmatpush1.bf16.msra.mxu1 %v2498_v30  ;;  %v2554_v29 = vld [vmem:[#allocation8 + $0x290] sm:$0xff]   ;;  %v2555_v30 = vld [vmem:[#allocation8 + $0x258] sm:$0xff]  }
 0x228   :  { %1290 = vmatprep.subr.bf16.mxu0 %v2503_v31  ;;  %1331 = vmatprep.subr.bf16.mxu1 %v2506_v32  ;;  %v2557_v38 = vld [vmem:[#allocation8 + $0x218] sm:$0xff]   ;;  %v2559_v32 = vld [vmem:[#allocation8 + $0x260] sm:$0xff]  }
 0x229   :  { %1320 = vmatprep.mubr.bf16.mxu0 %v2753_v8  ;;  %1361 = vmatprep.mubr.bf16.mxu1 %v2753_v8  ;;  %v2558_v31 = vld [vmem:[#allocation8 + $0x298] sm:$0xff]  }
 0x22b   :  { %1291 = vmatpush1.bf16.msra.mxu0 %v2501_v33  ;;  %1332 = vmatpush1.bf16.msra.mxu1 %v2504_v35  ;;  %v2560_v33 = vld [vmem:[#allocation8 + $0x2e0] sm:$0xff]  }
 0x22c   :  { %1292 = vmatprep.subr.bf16.mxu0 %v2509_v36  ;;  %1333 = vmatprep.subr.bf16.mxu1 %v2512_v37  ;;  %v2561_v35 = vld [vmem:[#allocation8 + $0x220] sm:$0xff]   ;;  %v2563_v37 = vld [vmem:[#allocation8 + $0x268] sm:$0xff]  }
 0x22d   :  { %v2562_v36 = vld [vmem:[#allocation8 + $0x2a0] sm:$0xff]  }
 0x22f   :  { %1293 = vmatpush1.bf16.msra.mxu0 %v2507_v39  ;;  %1334 = vmatpush1.bf16.msra.mxu1 %v2510_v40  ;;  %v2564_v39 = vld [vmem:[#allocation8 + $0x2e8] sm:$0xff]  }
 0x230   :  { %1294 = vmatprep.subr.bf16.mxu0 %v2515_v41  ;;  %1335 = vmatprep.subr.bf16.mxu1 %v2518_v42  ;;  %v2565_v40 = vld [vmem:[#allocation8 + $0x228] sm:$0xff]   ;;  %v2567_v42 = vld [vmem:[#allocation8 + $0x270] sm:$0xff]  }
 0x231   :  { %v2566_v41 = vld [vmem:[#allocation8 + $0x2a8] sm:$0xff]  }
 0x233   :  { %1295 = vmatpush1.bf16.msra.mxu0 %v2513_v43  ;;  %1336 = vmatpush1.bf16.msra.mxu1 %v2516_v44  ;;  %v2568_v43 = vld [vmem:[#allocation8 + $0x2f0] sm:$0xff]  }
 0x234   :  { %1296 = vmatprep.subr.bf16.mxu0 %v2521_v45  ;;  %1337 = vmatprep.subr.bf16.mxu1 %v2524_v46  ;;  %v2569_v44 = vld [vmem:[#allocation8 + $0x230] sm:$0xff]   ;;  %v2571_v46 = vld [vmem:[#allocation8 + $0x278] sm:$0xff]  }
 0x235   :  { %v2570_v45 = vld [vmem:[#allocation8 + $0x2b0] sm:$0xff]  }
 0x237   :  { %1297 = vmatpush1.bf16.msra.mxu0 %v2519_v47  ;;  %1338 = vmatpush1.bf16.msra.mxu1 %v2522_v48  ;;  %v2572_v47 = vld [vmem:[#allocation8 + $0x2f8] sm:$0xff]  }
 0x238   :  { %1298 = vmatprep.subr.bf16.mxu0 %v2527_v49  ;;  %1339 = vmatprep.subr.bf16.mxu1 %v2530_v50  ;;  %v2573_v48 = vld [vmem:[#allocation8 + $0x238] sm:$0xff]   ;;  %v2577_v50 = vld [vmem:[#allocation9 + $0x204] ss:$16 sps:$4 sm:$0xff]  }
 0x239   :  { %v2574_v49 = vld [vmem:[#allocation8 + $0x2b8] sm:$0xff]  }
 0x23b   :  { %1299 = vmatpush1.bf16.msra.mxu0 %v2525_v51  ;;  %1340 = vmatpush1.bf16.msra.mxu1 %v2528_v52  ;;  %v2580_v51 = vld [vmem:[#allocation9 + $0x20c] ss:$16 sps:$4 sm:$0xff]   ;;  %v2143_v52 = vld [vmem:[%s2964_s4 + $0x4] sm:$0xf] }
 0x23c   :  { %1300 = vmatprep.subr.bf16.mxu0 %v2533_v53  ;;  %1341 = vmatprep.subr.bf16.mxu1 %v2536_v54  ;;  %v1111_v53 = vrot.slane %v2143_v52, %v2851_v61  ;;  %v1119_v54 = vrot.slane %v2143_v52, %v2853_v62 }
 0x23f   :  { %1301 = vmatpush1.bf16.msra.mxu0 %v2531_v55  ;;  %1342 = vmatpush1.bf16.msra.mxu1 %v2534_v56  ;;  %v1115_v55 = vrot.slane %v2143_v52, %v2858_v0  ;;  %v1123_v56 = vrot.slane %v2143_v52, %v2860_v1  ;;  %v2622_v52 = vld [vmem:[#allocation9 + $0x2ec] ss:$16 sps:$4 sm:$0xff]  }
 0x240   :  { %1302 = vmatprep.subr.bf16.mxu0 %v2539_v57  ;;  %1343 = vmatprep.subr.bf16.mxu1 %v2542_v58 }
 0x243   :  { %1303 = vmatpush1.bf16.msra.mxu0 %v2537_v59  ;;  %1344 = vmatpush1.bf16.msra.mxu1 %v2540_v60 }
 0x244   :  { %2329 = vmatprep.subr.bf16.mxu0 %v2543_v63  ;;  %2351 = vmatprep.subr.bf16.mxu1 %v2544_v2 }
 0x2f9   :  { %v2301_v3 = vpop.f32.mrb[8].mxu0  ;;  %v2323_v4 = vpop.f32.mrb[8].mxu1 }
 0x2fa   :  { %v2302_v5 = vpop.f32.mrb[9].mxu0  ;;  %v2324_v6 = vpop.f32.mrb[9].mxu1 }
 0x2fb   :  { %v2303_v7 = vadd.f32 %v2302_v5, %v2301_v3  ;;  %v2325_v9 = vadd.f32 %v2324_v6, %v2323_v4  ;;  %v2304_v10 = vpop.f32.mrb[10].mxu0  ;;  %v2326_v11 = vpop.f32.mrb[10].mxu1 }
 0x2fc   :  { %v2305_v12 = vpop.f32.mrb[11].mxu0  ;;  %v2327_v13 = vpop.f32.mrb[11].mxu1  ;;  %v2902_v10 = vld [vmem:[#allocation6 + $0x8] sm:$0xff] }
 0x2fd   :  { %v1066_v14 = vadd.f32 %v2325_v9, %v2303_v7  ;;  %v2899_v7 = vld [vmem:[#allocation3] sm:$0xff] }
 0x2ff   :  { %v1071_v17 = vpack.c.bf16 %v1066_v14, %v1066_v14  ;;  %v2905_v14 = vld [vmem:[#allocation6] sm:$0xff] }
 0x301   :  { %1321 = vmatmul.mubr.bf16.vlgmr.msra.gmra.mrb[12].mxu0 %v1071_v17  ;;  %1362 = vmatmul.mubr.bf16.vlgmr.msra.gmra.mrb[12].mxu1 %v1071_v17 }
 0x302   :  { %2330 = vmatpush3.bf16.msra.mxu0 %v2545_v15  ;;  %2352 = vmatpush3.bf16.msra.mxu1 %v2546_v16  ;;  %v2908_v16 = vld [vmem:[#allocation6 + $0x10] sm:$0xff] }
 0x303   :  { %2331 = vmatprep.subr.bf16.mxu0 %v2547_v18  ;;  %2353 = vmatprep.subr.bf16.mxu1 %v2548_v19 }
 0x306   :  { %2332 = vmatpush3.bf16.msra.mxu0 %v2549_v20  ;;  %2354 = vmatpush3.bf16.msra.mxu1 %v2550_v21 }
 0x307   :  { %2333 = vmatprep.subr.bf16.mxu0 %v2551_v22  ;;  %2355 = vmatprep.subr.bf16.mxu1 %v2552_v27 }
 0x30a   :  { %2334 = vmatpush3.bf16.msra.mxu0 %v2553_v28  ;;  %2356 = vmatpush3.bf16.msra.mxu1 %v2554_v29  ;;  %v2575_v28 = vld [vmem:[#allocation9 + $0x200] ss:$16 sps:$4 sm:$0xff]   ;;  %v2578_v29 = vld [vmem:[#allocation9 + $0x208] ss:$16 sps:$4 sm:$0xff]  }
 0x30b   :  { %2335 = vmatprep.subr.bf16.mxu0 %v2555_v30  ;;  %2357 = vmatprep.subr.bf16.mxu1 %v2556_v34  ;;  %v2583_v30 = vld [vmem:[#allocation9 + $0x224] ss:$16 sps:$4 sm:$0xff]   ;;  %v2584_v34 = vld [vmem:[#allocation9 + $0x228] ss:$16 sps:$4 sm:$0xff]  }
 0x30e   :  { %2336 = vmatpush3.bf16.msra.mxu0 %v2557_v38  ;;  %2358 = vmatpush3.bf16.msra.mxu1 %v2558_v31  ;;  %v2589_v38 = vld [vmem:[#allocation9 + $0x244] ss:$16 sps:$4 sm:$0xff]   ;;  %v2592_v31 = vld [vmem:[#allocation9 + $0x24c] ss:$16 sps:$4 sm:$0xff]  }
 0x30f   :  { %2337 = vmatprep.subr.bf16.mxu0 %v2559_v32  ;;  %2359 = vmatprep.subr.bf16.mxu1 %v2560_v33  ;;  %v2587_v32 = vld [vmem:[#allocation9 + $0x240] ss:$16 sps:$4 sm:$0xff]   ;;  %v2590_v33 = vld [vmem:[#allocation9 + $0x248] ss:$16 sps:$4 sm:$0xff]  }
 0x312   :  { %2338 = vmatpush3.bf16.msra.mxu0 %v2561_v35  ;;  %2360 = vmatpush3.bf16.msra.mxu1 %v2562_v36  ;;  %v2595_v35 = vld [vmem:[#allocation9 + $0x264] ss:$16 sps:$4 sm:$0xff]   ;;  %v2598_v36 = vld [vmem:[#allocation9 + $0x26c] ss:$16 sps:$4 sm:$0xff]  }
 0x313   :  { %2339 = vmatprep.subr.bf16.mxu0 %v2563_v37  ;;  %2361 = vmatprep.subr.bf16.mxu1 %v2564_v39  ;;  %v2593_v37 = vld [vmem:[#allocation9 + $0x260] ss:$16 sps:$4 sm:$0xff]   ;;  %v2596_v39 = vld [vmem:[#allocation9 + $0x268] ss:$16 sps:$4 sm:$0xff]  }
 0x316   :  { %2340 = vmatpush3.bf16.msra.mxu0 %v2565_v40  ;;  %2362 = vmatpush3.bf16.msra.mxu1 %v2566_v41  ;;  %v2601_v40 = vld [vmem:[#allocation9 + $0x284] ss:$16 sps:$4 sm:$0xff]   ;;  %v2604_v41 = vld [vmem:[#allocation9 + $0x28c] ss:$16 sps:$4 sm:$0xff]  }
 0x317   :  { %2341 = vmatprep.subr.bf16.mxu0 %v2567_v42  ;;  %2363 = vmatprep.subr.bf16.mxu1 %v2568_v43  ;;  %v2599_v42 = vld [vmem:[#allocation9 + $0x280] ss:$16 sps:$4 sm:$0xff]   ;;  %v2607_v43 = vld [vmem:[#allocation9 + $0x2a4] ss:$16 sps:$4 sm:$0xff]  }
 0x31a   :  { %2342 = vmatpush3.bf16.msra.mxu0 %v2569_v44  ;;  %2364 = vmatpush3.bf16.msra.mxu1 %v2570_v45  ;;  %v2610_v44 = vld [vmem:[#allocation9 + $0x2ac] ss:$16 sps:$4 sm:$0xff]   ;;  %v2605_v45 = vld [vmem:[#allocation9 + $0x2a0] ss:$16 sps:$4 sm:$0xff]  }
 0x31b   :  { %2343 = vmatprep.subr.bf16.mxu0 %v2571_v46  ;;  %2365 = vmatprep.subr.bf16.mxu1 %v2572_v47  ;;  %v2608_v46 = vld [vmem:[#allocation9 + $0x2a8] ss:$16 sps:$4 sm:$0xff]   ;;  %v2613_v47 = vld [vmem:[#allocation9 + $0x2c4] ss:$16 sps:$4 sm:$0xff]  }
 0x31e   :  { %2344 = vmatpush3.bf16.msra.mxu0 %v2573_v48  ;;  %2366 = vmatpush3.bf16.msra.mxu1 %v2574_v49  ;;  %v2616_v48 = vld [vmem:[#allocation9 + $0x2cc] ss:$16 sps:$4 sm:$0xff]   ;;  %v2611_v49 = vld [vmem:[#allocation9 + $0x2c0] ss:$16 sps:$4 sm:$0xff]  }
 0x31f   :  { %1936 = vmatprep.subr.bf16.mxu0 %v2577_v50  ;;  %1977 = vmatprep.subr.bf16.mxu1 %v2580_v51  ;;  %v2614_v50 = vld [vmem:[#allocation9 + $0x2c8] ss:$16 sps:$4 sm:$0xff]   ;;  %v2619_v51 = vld [vmem:[#allocation9 + $0x2e4] ss:$16 sps:$4 sm:$0xff]  }
 0x3d4   :  { %v1322_v57 = vpop.f32.mrb[12].mxu0  ;;  %v1363_v58 = vpop.f32.mrb[12].mxu1 }
 0x3d5   :  { %v1323_v59 = vadd.f32 %v1322_v57, %v1111_v53  ;;  %v1364_v60 = vadd.f32 %v1363_v58, %v1119_v54  ;;  %v1324_v63 = vpop.f32.mrb[13].mxu0  ;;  %v1365_v2 = vpop.f32.mrb[13].mxu1  ;;  %v2617_v53 = vld [vmem:[#allocation9 + $0x2e0] ss:$16 sps:$4 sm:$0xff]   ;;  %v2620_v54 = vld [vmem:[#allocation9 + $0x2e8] ss:$16 sps:$4 sm:$0xff]  }
 0x3d6   :  { %v1325_v3 = vadd.f32 %v1324_v63, %v1115_v55  ;;  %v1366_v4 = vadd.f32 %v1365_v2, %v1123_v56  ;;  %v1326_v5 = vpop.f32.mrb[14].mxu0  ;;  %v1367_v6 = vpop.f32.mrb[14].mxu1 }
 0x3d7   :  { %v1370_v9 = vmul.f32 %v2899_v7, %v1323_v59  ;;  %v1372_v11 = vmul.f32 %v2902_v10, %v1364_v60  ;;  %v1327_v12 = vpop.f32.mrb[15].mxu0  ;;  %v1368_v13 = vpop.f32.mrb[15].mxu1 }
 0x3d8   :  { %v1371_v15 = vmul.f32 %v2905_v14, %v1325_v3  ;;  %v1373_v17 = vmul.f32 %v2908_v16, %v1366_v4 }
 0x3d9   :  { %v2912_v18 = vadd.f32 %v1370_v9, %v2871_v23  ;;  %v2915_v19 = vadd.f32 %v1372_v11, %v2874_v24  ;;  %v2208_v9 = vld [vmem:[%s2964_s4 + $0x8] sm:$0xf]  ;;  %s2754_s4 = smov [#allocation11]  }
 0x3da   :  { %v2918_v20 = vadd.f32 %v1371_v15, %v2877_v25  ;;  %v2921_v21 = vadd.f32 %v1373_v17, %v2880_v26  ;;  %v2586_v25 = vld [vmem:[#allocation9 + $0x22c] ss:$16 sps:$4 sm:$0xff]   ;;  %v2581_v26 = vld [vmem:[#allocation9 + $0x220] ss:$16 sps:$4 sm:$0xff]   ;;  %v1759_v11 = vrot.slane %v2208_v9, %v2851_v61  ;;  %v1767_v12 = vrot.slane %v2208_v9, %v2853_v62  ;;  %s2036_s22 = sshll.u32 %s2754_s4, 4  ;;  %s2037_s22 = int_to_ptr.vmem [resolvable:$true] %s2036_s22 }
 0x3db   :  { %v1378_v23 = vpack.c.bf16 %v2912_v18, %v2912_v18  ;;  %v1380_v24 = vpack.c.bf16 %v2915_v19, %v2915_v19  ;;  %v1763_v13 = vrot.slane %v2208_v9, %v2858_v0  ;;  %v1771_v15 = vrot.slane %v2208_v9, %v2860_v1  ;;  %s2715_s23 = scalar_lea.vmem %s2037_s22, 512  ;;  %p2720_p5 = scmp.lt.s32.totalorder %s2037_s22, %s2037_s22 }
 0x3dc   :  { %v1379_v22 = vpack.c.bf16 %v2918_v20, %v2918_v20  ;;  %v1381_v27 = vpack.c.bf16 %v2921_v21, %v2921_v21  ;;  %p2716_p4 = scmp.ne.s32.totalorder %s2037_s22, %s2715_s23  ;;  %p2721_p6 = scmp.lt.s32.totalorder %s2715_s23, %s2715_s23 }
 0x3de   :  { %1671 = vmatprep.mubr.bf16.mxu0 %v1379_v22  ;;  %1711 = vmatprep.mubr.bf16.mxu1 %v1381_v27  ;;  %p2722_p7 = por %p2721_p6, %p2720_p5 }
 0x3df   :  { %1672 = vmatmul.mubr.bf16.vlgmr.msra.gmra.mrb[16].mxu0 %v1378_v23  ;;  %1712 = vmatmul.mubr.bf16.vlgmr.msra.gmra.mrb[16].mxu1 %v1380_v24 }
 0x3e0   :  { %1937 = vmatpush1.bf16.msra.mxu0 %v2575_v28  ;;  %1978 = vmatpush1.bf16.msra.mxu1 %v2578_v29  ;;  %p2723_p8 = pnand %p2722_p7, %p2716_p4 }
 0x3e1   :  { %1938 = vmatprep.subr.bf16.mxu0 %v2583_v30  ;;  %1979 = vmatprep.subr.bf16.mxu1 %v2586_v25 }
 0x3e2   :  { %1968 = vmatprep.mubr.bf16.mxu0 %v2753_v8  ;;  %2009 = vmatprep.mubr.bf16.mxu1 %v2753_v8  ;;  %v2602_v8 = vld [vmem:[#allocation9 + $0x288] ss:$16 sps:$4 sm:$0xff]  }
 0x3e4   :  { %1939 = vmatpush1.bf16.msra.mxu0 %v2581_v26  ;;  %1980 = vmatpush1.bf16.msra.mxu1 %v2584_v34 }
 0x3e5   :  { %1940 = vmatprep.subr.bf16.mxu0 %v2589_v38  ;;  %1981 = vmatprep.subr.bf16.mxu1 %v2592_v31 }
 0x3e8   :  { %1941 = vmatpush1.bf16.msra.mxu0 %v2587_v32  ;;  %1982 = vmatpush1.bf16.msra.mxu1 %v2590_v33 }
 0x3e9   :  { %1942 = vmatprep.subr.bf16.mxu0 %v2595_v35  ;;  %1983 = vmatprep.subr.bf16.mxu1 %v2598_v36 }
 0x3ec   :  { %1943 = vmatpush1.bf16.msra.mxu0 %v2593_v37  ;;  %1984 = vmatpush1.bf16.msra.mxu1 %v2596_v39 }
 0x3ed   :  { %1944 = vmatprep.subr.bf16.mxu0 %v2601_v40  ;;  %1985 = vmatprep.subr.bf16.mxu1 %v2604_v41 }
 0x3f0   :  { %1945 = vmatpush1.bf16.msra.mxu0 %v2599_v42  ;;  %1986 = vmatpush1.bf16.msra.mxu1 %v2602_v8 }
 0x3f1   :  { %1946 = vmatprep.subr.bf16.mxu0 %v2607_v43  ;;  %1987 = vmatprep.subr.bf16.mxu1 %v2610_v44 }
 0x3f4   :  { %1947 = vmatpush1.bf16.msra.mxu0 %v2605_v45  ;;  %1988 = vmatpush1.bf16.msra.mxu1 %v2608_v46 }
 0x3f5   :  { %1948 = vmatprep.subr.bf16.mxu0 %v2613_v47  ;;  %1989 = vmatprep.subr.bf16.mxu1 %v2616_v48 }
 0x3f8   :  { %1949 = vmatpush1.bf16.msra.mxu0 %v2611_v49  ;;  %1990 = vmatpush1.bf16.msra.mxu1 %v2614_v50 }
 0x3f9   :  { %1950 = vmatprep.subr.bf16.mxu0 %v2619_v51  ;;  %1991 = vmatprep.subr.bf16.mxu1 %v2622_v52 }
 0x3fc   :  { %1951 = vmatpush1.bf16.msra.mxu0 %v2617_v53  ;;  %1992 = vmatpush1.bf16.msra.mxu1 %v2620_v54 }
 0x4b2   :  { %v2345_v55 = vpop.f32.mrb[16].mxu0  ;;  %v2367_v56 = vpop.f32.mrb[16].mxu1 }
 0x4b3   :  { %v2346_v57 = vpop.f32.mrb[17].mxu0  ;;  %v2368_v58 = vpop.f32.mrb[17].mxu1 }
 0x4b4   :  { %v2347_v59 = vadd.f32 %v2346_v57, %v2345_v55  ;;  %v2369_v60 = vadd.f32 %v2368_v58, %v2367_v56  ;;  %v2348_v63 = vpop.f32.mrb[18].mxu0  ;;  %v2370_v2 = vpop.f32.mrb[18].mxu1 }
 0x4b5   :  { %v2349_v3 = vpop.f32.mrb[19].mxu0  ;;  %v2371_v4 = vpop.f32.mrb[19].mxu1 }
 0x4b6   :  { %v1714_v5 = vadd.f32 %v2369_v60, %v2347_v59 }
 0x4b8   :  { %v1719_v6 = vpack.c.bf16 %v1714_v5, %v1714_v5 }
 0x4ba   :  { %1969 = vmatmul.mubr.bf16.vlgmr.msra.gmra.mrb[20].mxu0 %v1719_v6  ;;  %2010 = vmatmul.mubr.bf16.vlgmr.msra.gmra.mrb[20].mxu1 %v1719_v6 }
 0x58d   :  { %v1970_v17 = vpop.f32.mrb[20].mxu0  ;;  %v2011_v22 = vpop.f32.mrb[20].mxu1 }
 0x58e   :  { %v1971_v27 = vadd.f32 %v1970_v17, %v1759_v11  ;;  %v2012_v28 = vadd.f32 %v2011_v22, %v1767_v12  ;;  %v1972_v29 = vpop.f32.mrb[21].mxu0  ;;  %v2013_v23 = vpop.f32.mrb[21].mxu1 }
 0x58f   :  { %v1973_v24 = vadd.f32 %v1972_v29, %v1763_v13  ;;  %v2014_v30 = vadd.f32 %v2013_v23, %v1771_v15  ;;  %v1974_v25 = vpop.f32.mrb[22].mxu0  ;;  %v2015_v26 = vpop.f32.mrb[22].mxu1 }
 0x590   :  { %v2018_v34 = vmul.f32 %v2899_v7, %v1971_v27  ;;  %v2020_v61 = vmul.f32 %v2902_v10, %v2012_v28  ;;  %v1975_v38 = vpop.f32.mrb[23].mxu0  ;;  %v2016_v62 = vpop.f32.mrb[23].mxu1 }
 0x591   :  { %v2019_v0 = vmul.f32 %v2905_v14, %v1973_v24  ;;  %v2021_v1 = vmul.f32 %v2908_v16, %v2014_v30 }
 0x592   :  { %v2022_v31 = vadd.f32 %v2018_v34, %v2912_v18  ;;  %v2024_v32 = vadd.f32 %v2020_v61, %v2915_v19 }
 0x593   :  { %v2023_v33 = vadd.f32 %v2019_v0, %v2918_v20  ;;  %v2025_v35 = vadd.f32 %v2021_v1, %v2921_v21 }
 0x594   :  { %2026 = vst [vmem:[#allocation11] sm:$0xff] %v2022_v31  ;;  %2028 = vst [vmem:[#allocation11 + $0x10] sm:$0xff] %v2024_v32 }
 0x595   :  { %2027 = vst [vmem:[#allocation11 + $0x8] sm:$0xff] %v2023_v33  ;;  %2029 = vst [vmem:[#allocation11 + $0x18] sm:$0xff] %v2025_v35 }
 0x596   :  { %2726 = shalt.err (!%p2723_p8)
}
 0x597   :  { %s2727_s26 = scalar_lea.hbm %s2965_s5, 512 }
 0x598   :  { %p2728_p9 = scmp.ne.s32.totalorder %s2965_s5, %s2727_s26  ;;  %p2731_p10 = scmp.lt.u32.totalorder %s2727_s26, %s2965_s5 }
 0x59a   :  { %p2733_p11 = pnand %p2731_p10, %p2728_p9 }
 0x59c   :  { %2736 = shalt.err (!%p2733_p11)
}
 0x59d   :  { %2039 = dma.vmem_to_hbm [thread:$0]  %s2037_s22, 512, %s2965_s5, [#allocation5]  }
 0x59e   :  { %2743 = dma.done.wait [#allocation5], 512  }
 0x59f   :  { %2744 = vsyncadd [#allocation5], 4294966784 }
 0x5a0   :  { %2043 = vsyncpa [#allocation4], 1 }
 0x5a1   :  { %2044 = vsyncpa [#allocation7], 1 }
 0x5a2   :  { %2045 = vsyncpa [#allocation10], 1 }
 0x5a3   :  { %2046 = vsyncpa [#allocation5], 1 }

</bundles_post_ra>
